<compile_context>
chip_gen: v5e
topology: v5e:2x2
jax: 0.10.0
libtpu: 0.0.40
codegen_flags: <defaults>
</compile_context>

<pallas_src>
import functools

import jax
import jax.numpy as jnp
from jax.experimental import pallas as pl
from jax.experimental.pallas import tpu as pltpu


# ----------------------------------------------------------------------------
# Hardware-aware helpers
# ----------------------------------------------------------------------------
@functools.lru_cache(maxsize=None)
def _vmem_budget() -> int:
    """~75% of per-core VMEM: ~48 MiB on v7x, ~96 MiB on v5e/v6e."""
    cap = 64 * 1024 * 1024                      # conservative fallback (v7x)
    try:
        info = pltpu.get_tpu_info()
        cap = int(getattr(info, "vmem_capacity_bytes", cap))
    except Exception:
        pass
    return min((cap * 3) // 4, 96 * 1024 * 1024)


def _round_up(x: int, m: int) -> int:
    return ((x + m - 1) // m) * m


def _pick_tm(batch: int, block_m: int) -> int:
    """Batch tile: full batch when tiny; else <= block_m and >=2 tiles for
    B >= 16 so both v7x TensorCores get batch tiles."""
    if batch <= 8:
        return batch
    tm = min(block_m, batch)
    if batch >= 16:
        tm = min(tm, _round_up(pl.cdiv(batch, 2), 8))
    return tm


def _pick_block(dim: int, candidates=(512, 256, 128)) -> int:
    for c in candidates:
        if dim % c == 0:
            return c
    return dim                                   # small / odd dim: one full block


def _cost(flops, bytes_accessed):
    return pl.CostEstimate(flops=int(flops), transcendentals=0,
                           bytes_accessed=int(bytes_accessed))


# ----------------------------------------------------------------------------
# Kernel 1: whole-MLP fusion (all weights VMEM-resident, h never leaves VMEM)
# ----------------------------------------------------------------------------
def _fused_mlp_kernel(*refs, n_layers: int):
    x_ref, o_ref = refs[0], refs[-1]
    h = x_ref[...]
    for i in range(n_layers):
        w_ref = refs[1 + 2 * i]
        b_ref = refs[2 + 2 * i]
        y = jnp.dot(h.astype(w_ref.dtype), w_ref[...],
                    preferred_element_type=jnp.float32) + b_ref[...]
        h = jnp.maximum(y, 0.0) if i + 1 < n_layers else y
    o_ref[...] = h.astype(o_ref.dtype)


def fused_mlp_pallas(x, layers, *, block_m=256):
    """layers = [(w_t [K,N] bf16, b [1,N] f32), ...]; last layer has no ReLU."""
    B, Kin = x.shape
    Op = layers[-1][0].shape[1]
    TM = _pick_tm(B, block_m)
    nm = pl.cdiv(B, TM)

    in_specs = [pl.BlockSpec((TM, Kin), lambda m: (m, 0))]
    args = [x]
    flops = 0
    wbytes = 0
    for w, b in layers:
        K_i, N_i = w.shape
        in_specs.append(pl.BlockSpec((K_i, N_i), lambda m: (0, 0)))   # resident
        in_specs.append(pl.BlockSpec((1, N_i), lambda m: (0, 0)))     # bias
        args += [w, b]
        flops += 2 * B * K_i * N_i
        wbytes += w.size * w.dtype.itemsize + b.size * b.dtype.itemsize

    return pl.pallas_call(
        functools.partial(_fused_mlp_kernel, n_layers=len(layers)),
        out_shape=jax.ShapeDtypeStruct((B, Op), jnp.float32),
        grid_spec=pltpu.PrefetchScalarGridSpec(
            num_scalar_prefetch=0,
            grid=(nm,),
            in_specs=in_specs,
            out_specs=pl.BlockSpec((TM, Op), lambda m: (m, 0)),
        ),
        compiler_params=pltpu.CompilerParams(
            dimension_semantics=("parallel",),
            vmem_limit_bytes=_vmem_budget(),
        ),
        cost_estimate=_cost(flops, wbytes + x.size * 4 + B * Op * 4),
    )(*args)


def _fused_fits(x, layers, *, block_m=256) -> bool:
    TM = _pick_tm(x.shape[0], block_m)
    wbytes = sum(w.size * w.dtype.itemsize + b.size * b.dtype.itemsize
                 for w, b in layers)
    Op = layers[-1][0].shape[1]
    io_bytes = 2 * TM * x.shape[1] * 4 + 2 * TM * Op * 4      # dbl-buffered tiles
    h_bytes = sum(TM * w.shape[1] * 4 for w, _ in layers)     # live activations
    return 2 * wbytes + io_bytes + h_bytes < (_vmem_budget() * 4) // 5


# ----------------------------------------------------------------------------
# Kernel 2 (fallback for big models): M/N/K-tiled Linear, bf16 weight streaming,
# accumulation directly into the resident f32 output block.
# ----------------------------------------------------------------------------
def _linear_kernel(x_ref, w_ref, b_ref, o_ref, *, relu: bool):
    k = pl.program_id(2)

    @pl.when(k == 0)
    def _init():
        o_ref[...] = jnp.zeros_like(o_ref)

    o_ref[...] += jnp.dot(x_ref[...].astype(w_ref.dtype), w_ref[...],
                          preferred_element_type=jnp.float32)

    @pl.when(k == pl.num_programs(2) - 1)
    def _epilogue():
        y = o_ref[...] + b_ref[...]
        if relu:
            y = jnp.maximum(y, 0.0)
        o_ref[...] = y


def linear_pallas(x, w_t, b, *, relu=False, block_m=256, block_n=512, block_k=512):
    """y = [relu](x @ w_t + b); w_t [K,N] pre-transposed bf16, b [1,N] f32."""
    B, K = x.shape
    Kw, N = w_t.shape
    assert K == Kw
    TM = _pick_tm(B, block_m)
    TK = _pick_block(K, (block_k, 256, 128))
    TN = _pick_block(N, (block_n, 256, 128))
    grid = (pl.cdiv(B, TM), N // TN, K // TK)    # reduction axis last

    return pl.pallas_call(
        functools.partial(_linear_kernel, relu=relu),
        out_shape=jax.ShapeDtypeStruct((B, N), jnp.float32),
        grid_spec=pltpu.PrefetchScalarGridSpec(
            num_scalar_prefetch=0,
            grid=grid,
            in_specs=[
                pl.BlockSpec((TM, TK), lambda m, n, k: (m, k)),   # activations
                pl.BlockSpec((TK, TN), lambda m, n, k: (k, n)),   # weight slab
                pl.BlockSpec((1, TN), lambda m, n, k: (0, n)),    # bias
            ],
            out_specs=pl.BlockSpec((TM, TN), lambda m, n, k: (m, n)),
        ),
        compiler_params=pltpu.CompilerParams(
            dimension_semantics=("parallel", "parallel", "arbitrary"),
            vmem_limit_bytes=_vmem_budget(),
        ),
        cost_estimate=_cost(
            2 * B * K * N,
            x.size * 4 + w_t.size * w_t.dtype.itemsize + b.size * 4 + B * N * 4),
    )(x, w_t, b)


# ----------------------------------------------------------------------------
# Init: stats + parameters (transposed once, norm-folded, 128-padded, bf16)
# ----------------------------------------------------------------------------
def normalize_stats(data):
    """PyTorch Normalize semantics: NaN-row-masked mean / std (ddof=1).
    Eager init-time only (boolean-mask indexing is not jit-traceable)."""
    data = data.reshape(-1, data.shape[-1])
    mask = ~jnp.any(jnp.isnan(data), axis=1)
    d = data[mask]
    return jnp.mean(d, axis=0), jnp.std(d, axis=0, ddof=1)


def _linear_init(key, fan_in, fan_out):
    kw, kb = jax.random.split(key)
    bound = 1.0 / (fan_in ** 0.5)
    w = jax.random.uniform(kw, (fan_out, fan_in), jnp.float32, -bound, bound)
    b = jax.random.uniform(kb, (fan_out,), jnp.float32, -bound, bound)
    return w, b


def _pad_to(a, shape):
    return jnp.pad(a, [(0, s - d) for d, s in zip(a.shape, shape)])


def init_sigma(key, sigma_size, state_size, hidden_size, n_layers,
               sigma_data, state_data, output_data, param_dtype=jnp.bfloat16):
    tri = sigma_size * (sigma_size + 1) // 2
    in_size = tri + state_size
    out_size = tri
    Hp = _round_up(hidden_size, 128)             # lane-dense hidden width
    Op = _round_up(out_size, 128)                # lane-dense output width

    keys = jax.random.split(key, n_layers + 2)
    linears = [_linear_init(keys[0], in_size, hidden_size)]
    for i in range(n_layers):
        linears.append(_linear_init(keys[1 + i], hidden_size, hidden_size))
    linears.append(_linear_init(keys[-1], hidden_size, out_size))

    s_mean, s_std = normalize_stats(sigma_data)
    t_mean, t_std = normalize_stats(state_data)
    o_mean, o_std = normalize_stats(output_data)

    # raw torch-layout f32 params + stats (exact reference only)
    raw = {"linears": linears,
           "sig_mean": s_mean, "sig_std": s_std,
           "st_mean": t_mean, "st_std": t_std,
           "out_mean": o_mean, "out_std": o_std}

    # fold input normalization into layer 1:  norm(x) @ W = x @ (inv*W) - (m*inv)@W
    in_mean = jnp.concatenate([s_mean, t_mean])
    in_inv = jnp.concatenate([1.0 / s_std, 1.0 / t_std])
    w1, b1 = linears[0]                          # torch layout [H, in]
    w1_t = w1.T                                  # [in, H]
    w1_f = in_inv[:, None] * w1_t
    b1_f = b1 - (in_mean * in_inv) @ w1_t
    layers = [(_pad_to(w1_f, (in_size, Hp)).astype(param_dtype),
               _pad_to(b1_f, (Hp,)).reshape(1, Hp).astype(jnp.float32))]

    for w, b in linears[1:-1]:
        layers.append((_pad_to(w.T, (Hp, Hp)).astype(param_dtype),
                       _pad_to(b, (Hp,)).reshape(1, Hp).astype(jnp.float32)))

    wo, bo = linears[-1]
    wo_t = wo.T                                  # [H, out]
    out_raw = (_pad_to(wo_t, (Hp, Op)).astype(param_dtype),
               _pad_to(bo, (Op,)).reshape(1, Op).astype(jnp.float32))
    # fold output normalization: (y - mu)/std == y*(1/std) - mu*(1/std)
    o_inv = 1.0 / o_std
    out_norm = (_pad_to(wo_t * o_inv[None, :], (Hp, Op)).astype(param_dtype),
                _pad_to((bo - o_mean) * o_inv, (Op,)).reshape(1, Op).astype(jnp.float32))

    params = {"layers": layers, "out_raw": out_raw, "out_norm": out_norm}
    meta = {"out_size": out_size}
    return params, raw, meta


# ----------------------------------------------------------------------------
# Forward
# ----------------------------------------------------------------------------
@functools.partial(jax.jit, static_argnames=("out_size", "norm_out", "force_unfused"))
def sigma_forward(params, sigma, state, *, out_size, norm_out=True,
                  force_unfused=False):
    # Normalizations are pre-folded into the weights; the concat is done once
    # here (tiny) so every layer is a plain Linear.
    x = jnp.concatenate([sigma, state], axis=1)
    layers = list(params["layers"]) + [params["out_norm"] if norm_out
                                       else params["out_raw"]]
    if not force_unfused and _fused_fits(x, layers):
        y = fused_mlp_pallas(x, layers)
    else:
        h = x
        for i, (w, b) in enumerate(layers):
            h = linear_pallas(h, w, b, relu=(i + 1 < len(layers)))
        y = h
    return y[:, :out_size]


def sigma_reference_matched(params, sigma, state, *, out_size, norm_out=True):
    """Same math as the kernels (folded norms, padded bf16 weights, f32 accum)."""
    x = jnp.concatenate([sigma, state], axis=1)
    layers = list(params["layers"]) + [params["out_norm"] if norm_out
                                       else params["out_raw"]]
    h = x
    for i, (w, b) in enumerate(layers):
        y = jnp.dot(h.astype(w.dtype), w, preferred_element_type=jnp.float32) + b
        h = jnp.maximum(y, 0.0) if i + 1 < len(layers) else y
    return h[:, :out_size]


def sigma_reference_f32(raw, sigma, state, norm_out=True):
    """Faithful f32 re-implementation of the PyTorch module."""
    xs = (sigma - raw["sig_mean"]) / raw["sig_std"]
    xt = (state - raw["st_mean"]) / raw["st_std"]
    h = jnp.concatenate([xs, xt], axis=1)
    for w, b in raw["linears"][:-1]:
        h = jnp.maximum(h @ w.T + b, 0.0)
    w, b = raw["linears"][-1]
    y = h @ w.T + b
    if norm_out:
        y = (y - raw["out_mean"]) / raw["out_std"]
    return y


if __name__ == "__main__":
    sigma_size, state_size, hidden_size, n_layers = 4, 6, 32, 2
    tri = sigma_size * (sigma_size + 1) // 2      # 10
    out_size = tri
    B = 8

    key = jax.random.PRNGKey(0)
    k_dsig, k_dst, k_dout, k_par, k_isig, k_ist, k_big = jax.random.split(key, 7)

    # Calibration datasets (one NaN row in sigma_data to exercise the mask).
    sigma_data = jax.random.normal(k_dsig, (64, tri), jnp.float32) * 2.0 + 0.5
    sigma_data = sigma_data.at[3, 0].set(jnp.nan)
    state_data = jax.random.normal(k_dst, (64, state_size), jnp.float32) * 1.5 - 0.3
    output_data = jax.random.normal(k_dout, (64, out_size), jnp.float32) * 0.7 + 1.0

    params, raw, meta = init_sigma(k_par, sigma_size, state_size, hidden_size,
                                   n_layers, sigma_data, state_data, output_data)

    sigma_in = jax.random.normal(k_isig, (B, tri), jnp.float32)
    state_in = jax.random.normal(k_ist, (B, state_size), jnp.float32)

    for norm_out in (True, False):
        out = sigma_forward(params, sigma_in, state_in,
                            out_size=meta["out_size"], norm_out=norm_out)
        out = jax.block_until_ready(out)
        assert out.shape == (B, out_size)
        ref = sigma_reference_matched(params, sigma_in, state_in,
                                      out_size=out_size, norm_out=norm_out)
        assert jnp.allclose(out, ref, atol=1e-3, rtol=1e-3), \
            f"fused mismatch (norm_out={norm_out})"
        # vs the exact f32 module semantics (bf16 weight storage is the only
        # source of difference)
        ref32 = sigma_reference_f32(raw, sigma_in, state_in, norm_out=norm_out)
        assert jnp.allclose(out, ref32, atol=1e-1, rtol=1e-1), \
            f"f32 reference drift too large (norm_out={norm_out})"

        # Also exercise the M/N/K-tiled streaming fallback path.
        out_u = sigma_forward(params, sigma_in, state_in,
                              out_size=meta["out_size"], norm_out=norm_out,
                              force_unfused=True)
        out_u = jax.block_until_ready(out_u)
        assert jnp.allclose(out_u, ref, atol=1e-3, rtol=1e-3), \
            f"unfused mismatch (norm_out={norm_out})"

    # Uneven multi-tile batch (>=2 batch tiles, masked last tile).
    B2 = 40
    sig2 = jax.random.normal(k_big, (B2, tri), jnp.float32)
    st2 = jax.random.normal(jax.random.fold_in(k_big, 1), (B2, state_size),
                            jnp.float32)
    out2 = jax.block_until_ready(
        sigma_forward(params, sig2, st2, out_size=out_size, norm_out=True))
    ref2 = sigma_reference_matched(params, sig2, st2,
                                   out_size=out_size, norm_out=True)
    assert out2.shape == (B2, out_size)
    assert jnp.allclose(out2, ref2, atol=1e-3, rtol=1e-3), "multi-tile mismatch"

    print("KERNEL_OK")
</pallas_src>

<mosaic_0001>
module attributes {stable_mosaic.version = 11 : i64} {
  func.func @_fused_mlp_kernel(%arg0: i32, %arg1: memref<8x16xf32, #tpu.memory_space<vmem>>, %arg2: memref<16x128xbf16, #tpu.memory_space<vmem>>, %arg3: memref<1x128xf32, #tpu.memory_space<vmem>>, %arg4: memref<128x128xbf16, #tpu.memory_space<vmem>>, %arg5: memref<1x128xf32, #tpu.memory_space<vmem>>, %arg6: memref<128x128xbf16, #tpu.memory_space<vmem>>, %arg7: memref<1x128xf32, #tpu.memory_space<vmem>>, %arg8: memref<128x128xbf16, #tpu.memory_space<vmem>>, %arg9: memref<1x128xf32, #tpu.memory_space<vmem>>, %arg10: memref<8x128xf32, #tpu.memory_space<vmem>>) attributes {dimension_semantics = [#tpu.dimension_semantics<parallel>], iteration_bounds = array<i64: 1>, scalar_prefetch = 0 : i64, scratch_operands = 0 : i64, tpu.core_type = #tpu.core_type<tc>, window_params = [{transform_indices = @transform_0, window_bounds = array<i64: 8, 16>}, {pipeline_mode = #tpu.pipeline_mode<synchronous>, transform_indices = @transform_1, window_bounds = array<i64: 16, 128>}, {pipeline_mode = #tpu.pipeline_mode<synchronous>, transform_indices = @transform_2, window_bounds = array<i64: 1, 128>}, {pipeline_mode = #tpu.pipeline_mode<synchronous>, transform_indices = @transform_3, window_bounds = array<i64: 128, 128>}, {pipeline_mode = #tpu.pipeline_mode<synchronous>, transform_indices = @transform_4, window_bounds = array<i64: 1, 128>}, {pipeline_mode = #tpu.pipeline_mode<synchronous>, transform_indices = @transform_5, window_bounds = array<i64: 128, 128>}, {pipeline_mode = #tpu.pipeline_mode<synchronous>, transform_indices = @transform_6, window_bounds = array<i64: 1, 128>}, {pipeline_mode = #tpu.pipeline_mode<synchronous>, transform_indices = @transform_7, window_bounds = array<i64: 128, 128>}, {pipeline_mode = #tpu.pipeline_mode<synchronous>, transform_indices = @transform_8, window_bounds = array<i64: 1, 128>}, {transform_indices = @transform_9, window_bounds = array<i64: 8, 128>}]} {
    %c0 = arith.constant 0 : index
    %c0_0 = arith.constant 0 : index
    %0 = vector.load %arg1[%c0, %c0_0] : memref<8x16xf32, #tpu.memory_space<vmem>>, vector<8x16xf32>
    %1 = arith.truncf %0 : vector<8x16xf32> to vector<8x16xbf16>
    %c0_1 = arith.constant 0 : index
    %c0_2 = arith.constant 0 : index
    %2 = vector.load %arg2[%c0_1, %c0_2] : memref<16x128xbf16, #tpu.memory_space<vmem>>, vector<16x128xbf16>
    %cst = arith.constant dense<0.000000e+00> : vector<8x128xf32>
    %3 = tpu.matmul %1, %2, %cst {dimension_numbers = #tpu.dot_dimension_numbers<[1], [0], [0], [1], [0, 0, 1, 1], [], []>} : vector<8x16xbf16>, vector<16x128xbf16>, vector<8x128xf32> -> vector<8x128xf32>
    %c0_3 = arith.constant 0 : index
    %c0_4 = arith.constant 0 : index
    %4 = vector.load %arg3[%c0_3, %c0_4] : memref<1x128xf32, #tpu.memory_space<vmem>>, vector<1x128xf32>
    %5 = vector.broadcast %4 : vector<1x128xf32> to vector<8x128xf32>
    %6 = arith.addf %3, %5 : vector<8x128xf32>
    %cst_5 = arith.constant 0.000000e+00 : f32
    %7 = vector.broadcast %cst_5 : f32 to vector<8x128xf32>
    %8 = arith.maximumf %6, %7 : vector<8x128xf32>
    %9 = arith.truncf %8 : vector<8x128xf32> to vector<8x128xbf16>
    %c0_6 = arith.constant 0 : index
    %c0_7 = arith.constant 0 : index
    %10 = vector.load %arg4[%c0_6, %c0_7] : memref<128x128xbf16, #tpu.memory_space<vmem>>, vector<128x128xbf16>
    %cst_8 = arith.constant dense<0.000000e+00> : vector<8x128xf32>
    %11 = tpu.matmul %9, %10, %cst_8 {dimension_numbers = #tpu.dot_dimension_numbers<[1], [0], [0], [1], [0, 0, 1, 1], [], []>} : vector<8x128xbf16>, vector<128x128xbf16>, vector<8x128xf32> -> vector<8x128xf32>
    %c0_9 = arith.constant 0 : index
    %c0_10 = arith.constant 0 : index
    %12 = vector.load %arg5[%c0_9, %c0_10] : memref<1x128xf32, #tpu.memory_space<vmem>>, vector<1x128xf32>
    %13 = vector.broadcast %12 : vector<1x128xf32> to vector<8x128xf32>
    %14 = arith.addf %11, %13 : vector<8x128xf32>
    %cst_11 = arith.constant 0.000000e+00 : f32
    %15 = vector.broadcast %cst_11 : f32 to vector<8x128xf32>
    %16 = arith.maximumf %14, %15 : vector<8x128xf32>
    %17 = arith.truncf %16 : vector<8x128xf32> to vector<8x128xbf16>
    %c0_12 = arith.constant 0 : index
    %c0_13 = arith.constant 0 : index
    %18 = vector.load %arg6[%c0_12, %c0_13] : memref<128x128xbf16, #tpu.memory_space<vmem>>, vector<128x128xbf16>
    %cst_14 = arith.constant dense<0.000000e+00> : vector<8x128xf32>
    %19 = tpu.matmul %17, %18, %cst_14 {dimension_numbers = #tpu.dot_dimension_numbers<[1], [0], [0], [1], [0, 0, 1, 1], [], []>} : vector<8x128xbf16>, vector<128x128xbf16>, vector<8x128xf32> -> vector<8x128xf32>
    %c0_15 = arith.constant 0 : index
    %c0_16 = arith.constant 0 : index
    %20 = vector.load %arg7[%c0_15, %c0_16] : memref<1x128xf32, #tpu.memory_space<vmem>>, vector<1x128xf32>
    %21 = vector.broadcast %20 : vector<1x128xf32> to vector<8x128xf32>
    %22 = arith.addf %19, %21 : vector<8x128xf32>
    %cst_17 = arith.constant 0.000000e+00 : f32
    %23 = vector.broadcast %cst_17 : f32 to vector<8x128xf32>
    %24 = arith.maximumf %22, %23 : vector<8x128xf32>
    %25 = arith.truncf %24 : vector<8x128xf32> to vector<8x128xbf16>
    %c0_18 = arith.constant 0 : index
    %c0_19 = arith.constant 0 : index
    %26 = vector.load %arg8[%c0_18, %c0_19] : memref<128x128xbf16, #tpu.memory_space<vmem>>, vector<128x128xbf16>
    %cst_20 = arith.constant dense<0.000000e+00> : vector<8x128xf32>
    %27 = tpu.matmul %25, %26, %cst_20 {dimension_numbers = #tpu.dot_dimension_numbers<[1], [0], [0], [1], [0, 0, 1, 1], [], []>} : vector<8x128xbf16>, vector<128x128xbf16>, vector<8x128xf32> -> vector<8x128xf32>
    %c0_21 = arith.constant 0 : index
    %c0_22 = arith.constant 0 : index
    %28 = vector.load %arg9[%c0_21, %c0_22] : memref<1x128xf32, #tpu.memory_space<vmem>>, vector<1x128xf32>
    %29 = vector.broadcast %28 : vector<1x128xf32> to vector<8x128xf32>
    %30 = arith.addf %27, %29 : vector<8x128xf32>
    %c0_23 = arith.constant 0 : index
    %c0_24 = arith.constant 0 : index
    %31 = vector.load %arg10[%c0_23, %c0_24] : memref<8x128xf32, #tpu.memory_space<vmem>>, vector<8x128xf32>
    tpu.vector_store %arg10[%c0_23, %c0_24], %30 {strides = array<i32>} : memref<8x128xf32, #tpu.memory_space<vmem>>, vector<8x128xf32>,
    return
  }
  func.func @transform_0(%arg0: i32) -> (i32, i32) {
    %c0_i32 = arith.constant 0 : i32
    %c0_i32_0 = arith.constant 0 : i32
    return %arg0, %c0_i32 : i32, i32
  }
  func.func @transform_1(%arg0: i32) -> (i32, i32) {
    %c0_i32 = arith.constant 0 : i32
    %c0_i32_0 = arith.constant 0 : i32
    %c0_i32_1 = arith.constant 0 : i32
    return %c0_i32, %c0_i32_0 : i32, i32
  }
  func.func @transform_2(%arg0: i32) -> (i32, i32) {
    %c0_i32 = arith.constant 0 : i32
    %c0_i32_0 = arith.constant 0 : i32
    %c0_i32_1 = arith.constant 0 : i32
    return %c0_i32, %c0_i32_0 : i32, i32
  }
  func.func @transform_3(%arg0: i32) -> (i32, i32) {
    %c0_i32 = arith.constant 0 : i32
    %c0_i32_0 = arith.constant 0 : i32
    %c0_i32_1 = arith.constant 0 : i32
    return %c0_i32, %c0_i32_0 : i32, i32
  }
  func.func @transform_4(%arg0: i32) -> (i32, i32) {
    %c0_i32 = arith.constant 0 : i32
    %c0_i32_0 = arith.constant 0 : i32
    %c0_i32_1 = arith.constant 0 : i32
    return %c0_i32, %c0_i32_0 : i32, i32
  }
  func.func @transform_5(%arg0: i32) -> (i32, i32) {
    %c0_i32 = arith.constant 0 : i32
    %c0_i32_0 = arith.constant 0 : i32
    %c0_i32_1 = arith.constant 0 : i32
    return %c0_i32, %c0_i32_0 : i32, i32
  }
  func.func @transform_6(%arg0: i32) -> (i32, i32) {
    %c0_i32 = arith.constant 0 : i32
    %c0_i32_0 = arith.constant 0 : i32
    %c0_i32_1 = arith.constant 0 : i32
    return %c0_i32, %c0_i32_0 : i32, i32
  }
  func.func @transform_7(%arg0: i32) -> (i32, i32) {
    %c0_i32 = arith.constant 0 : i32
    %c0_i32_0 = arith.constant 0 : i32
    %c0_i32_1 = arith.constant 0 : i32
    return %c0_i32, %c0_i32_0 : i32, i32
  }
  func.func @transform_8(%arg0: i32) -> (i32, i32) {
    %c0_i32 = arith.constant 0 : i32
    %c0_i32_0 = arith.constant 0 : i32
    %c0_i32_1 = arith.constant 0 : i32
    return %c0_i32, %c0_i32_0 : i32, i32
  }
  func.func @transform_9(%arg0: i32) -> (i32, i32) {
    %c0_i32 = arith.constant 0 : i32
    %c0_i32_0 = arith.constant 0 : i32
    return %arg0, %c0_i32 : i32, i32
  }
}

</mosaic_0001>

<bundles_post_ra>
// kernel: sigma_forward.1
= control target key start
LH: loop header
LB: loop body
LE: loop exit
PB: predicated region body
PF: predicated region fallthrough
CT: control target
= control target key end

     0   :  { %14 = vsyncpa [#allocation3], 0  ;;  %s704_s0 = inlined_call_operand.vmem [shape: f32[8,16], index: 0, kind: input, shape index: {}]   ;;  %s705_s1 = inlined_call_operand.vmem [shape: bf16[16,128], index: 1, kind: input, shape index: {}]   ;;  %s706_s2 = inlined_call_operand.vmem [shape: f32[1,128], index: 2, kind: input, shape index: {}]   ;;  %s707_s3 = inlined_call_operand.hbm [shape: bf16[128,128], index: 3, kind: input, shape index: {}]   ;;  %s708_s4 = inlined_call_operand.vmem [shape: f32[1,128], index: 4, kind: input, shape index: {}]   ;;  %s709_s5 = inlined_call_operand.hbm [shape: bf16[128,128], index: 5, kind: input, shape index: {}]   ;;  %s710_s6 = inlined_call_operand.vmem [shape: f32[1,128], index: 6, kind: input, shape index: {}]   ;;  %s711_s7 = inlined_call_operand.hbm [shape: bf16[128,128], index: 7, kind: input, shape index: {}]   ;;  %s712_s8 = inlined_call_operand.vmem [shape: f32[1,128], index: 8, kind: input, shape index: {}]   ;;  %s713_s9 = inlined_call_operand.hbm [shape: f32[8,128], index: 9, kind: output, shape index: {}]  }
   0x1   :  { %15 = vsyncpa [#allocation6], 0 }
   0x2   :  { %16 = vsyncpa [#allocation4], 0  ;;  %s42_s11 = sshll.u32 %s709_s5, 4  ;;  %s618_s12 = smov [#allocation5]   ;;  %s43_s11 = int_to_ptr.hbm [resolvable:$true] %s42_s11 }
   0x3   :  { %s44_s13 = sshll.u32 %s618_s12, 4  ;;  %s27_s16 = sshll.u32 %s707_s3, 4  ;;  %s45_s13 = int_to_ptr.vmem [resolvable:$true] %s44_s13  ;;  %s28_s16 = int_to_ptr.hbm [resolvable:$true] %s27_s16 }
   0x4   :  { %s619_s17 = smov 64   ;;  %s620_s18 = smov 4  }
   0x5   :  { %50 = dma.hbm_to_vmem [thread:$0]  %s43_s11, 1024, %s45_s13, [#allocation6], %s619_s17, %s619_s17, %s620_s18  }
   0x6   :  { %s621_s19 = smov [#allocation2]   ;;  %s57_s23 = sshll.u32 %s711_s7, 4  ;;  %s58_s23 = int_to_ptr.hbm [resolvable:$true] %s57_s23 }
   0x7   :  { %s29_s20 = sshll.u32 %s621_s19, 4  ;;  %s622_s5 = smov [#allocation7]   ;;  %s30_s20 = int_to_ptr.vmem [resolvable:$true] %s29_s20 }
   0x8   :  { %35 = dma.hbm_to_vmem [thread:$0]  %s28_s16, 1024, %s30_s20, [#allocation3], %s619_s17, %s619_s17, %s620_s18  }
   0x9   :  { %s59_s24 = sshll.u32 %s622_s5, 4  ;;  %s60_s24 = int_to_ptr.vmem [resolvable:$true] %s59_s24 }
   0xa   :  { %65 = dma.hbm_to_vmem [thread:$0]  %s58_s23, 1024, %s60_s24, [#allocation6], %s619_s17, %s619_s17, %s620_s18  }
   0xb   :  { %612 = dma.done.wait [#allocation3], 1024  }
   0xc   :  { %613 = vsyncadd [#allocation3], 4294966272 }
   0xd   :  { %614 = dma.done.wait [#allocation6], 2048  }
   0xe   :  { %615 = vsyncadd [#allocation6], 4294965248  ;;  %v481_v0 = vld [vmem:[%s705_s1] sm:$0xff]  ;;  %v489_v2 = vld [vmem:[#allocation2 + $0x38] sm:$0xff]  ;;  %vm95_vm0 = vcmask 130048   ;;  %s623_s10 = smov [#allocation8]  }
   0xf   :  { %v81_v1 = vld [vmem:[%s704_s0] sm:$0xff]  ;;  %106 = vmatpush.bf16.msra.mxu0 %v481_v0  ;;  %182 = vmatpush.bf16.msra.mxu1 %v489_v2  ;;  %v488_v4 = vld [vmem:[#allocation2 + $0x30] sm:$0xff]  ;;  %v487_v5 = vld [vmem:[#allocation2 + $0x28] sm:$0xff]  ;;  %s367_s11 = sshll.u32 %s623_s10, 4  ;;  %s369_s14 = sshll.u32 %s713_s9, 4  ;;  %s368_s11 = int_to_ptr.vmem [resolvable:$true] %s367_s11  ;;  %s370_s14 = int_to_ptr.hbm [resolvable:$true] %s369_s14 }
  0x10   :  { %v82_v3 = vpack.c.bf16 %v81_v1, %v81_v1  ;;  %v486_v6 = vld [vmem:[#allocation2 + $0x20] sm:$0xff]  ;;  %v485_v7 = vld [vmem:[#allocation2 + $0x18] sm:$0xff]  ;;  %v484_v8 = vld [vmem:[#allocation2 + $0x10] sm:$0xff] }
  0x11   :  { %v483_v9 = vld [vmem:[#allocation2 + $0x8] sm:$0xff]  ;;  %v482_v10 = vld [vmem:[#allocation2] sm:$0xff]  ;;  %v497_v11 = vld [vmem:[#allocation5 + $0x38] sm:$0xff] }
  0x12   :  { %384 = vmatmul.msk.bf16.vlgmr.msra.gmra.mxu0 %vm95_vm0, %v82_v3  ;;  %265 = vmatpush.bf16.msra.mxu2 %v497_v11  ;;  %v496_v12 = vld [vmem:[#allocation5 + $0x30] sm:$0xff]  ;;  %v495_v13 = vld [vmem:[#allocation5 + $0x28] sm:$0xff]  ;;  %v494_v14 = vld [vmem:[#allocation5 + $0x20] sm:$0xff] }
  0x13   :  { %183 = vmatpush.bf16.msra.mxu1 %v488_v4  ;;  %v493_v15 = vld [vmem:[#allocation5 + $0x18] sm:$0xff]  ;;  %v492_v16 = vld [vmem:[#allocation5 + $0x10] sm:$0xff]  ;;  %v512_v17 = vld [vmem:[%s706_s2] ss:$0 sm:$0xff] }
  0x14   :  { %v491_v23 = vld [vmem:[#allocation5 + $0x8] sm:$0xff]  ;;  %v490_v24 = vld [vmem:[#allocation5] sm:$0xff]  ;;  %v505_v25 = vld [vmem:[#allocation7 + $0x38] sm:$0xff] }
  0x15   :  { %348 = vmatpush.bf16.msra.mxu3 %v505_v25  ;;  %v504_v26 = vld [vmem:[#allocation7 + $0x30] sm:$0xff]  ;;  %v503_v27 = vld [vmem:[#allocation7 + $0x28] sm:$0xff]  ;;  %v502_v28 = vld [vmem:[#allocation7 + $0x20] sm:$0xff] }
  0x16   :  { %266 = vmatpush.bf16.msra.mxu2 %v496_v12  ;;  %v501_v29 = vld [vmem:[#allocation7 + $0x18] sm:$0xff]  ;;  %v500_v30 = vld [vmem:[#allocation7 + $0x10] sm:$0xff]  ;;  %v513_v31 = vld [vmem:[%s708_s4] ss:$0 sm:$0xff] }
  0x17   :  { %184 = vmatpush.bf16.msra.mxu1 %v487_v5  ;;  %v499_v37 = vld [vmem:[#allocation7 + $0x8] sm:$0xff]  ;;  %v498_v38 = vld [vmem:[#allocation7] sm:$0xff] }
  0x18   :  { %v514_v39 = vld [vmem:[%s710_s6] ss:$0 sm:$0xff] }
  0x19   :  { %349 = vmatpush.bf16.msra.mxu3 %v504_v26  ;;  %v515_v45 = vld [vmem:[%s712_s8] ss:$0 sm:$0xff] }
  0x1a   :  { %267 = vmatpush.bf16.msra.mxu2 %v495_v13 }
  0x1b   :  { %185 = vmatpush.bf16.msra.mxu1 %v486_v6 }
  0x1d   :  { %350 = vmatpush.bf16.msra.mxu3 %v503_v27 }
  0x1e   :  { %268 = vmatpush.bf16.msra.mxu2 %v494_v14 }
  0x1f   :  { %186 = vmatpush.bf16.msra.mxu1 %v485_v7 }
  0x21   :  { %351 = vmatpush.bf16.msra.mxu3 %v502_v28 }
  0x22   :  { %269 = vmatpush.bf16.msra.mxu2 %v493_v15 }
  0x23   :  { %187 = vmatpush.bf16.msra.mxu1 %v484_v8 }
  0x25   :  { %352 = vmatpush.bf16.msra.mxu3 %v501_v29 }
  0x26   :  { %270 = vmatpush.bf16.msra.mxu2 %v492_v16 }
  0x27   :  { %188 = vmatpush.bf16.msra.mxu1 %v483_v9 }
  0x29   :  { %353 = vmatpush.bf16.msra.mxu3 %v500_v30 }
  0x2a   :  { %271 = vmatpush.bf16.msra.mxu2 %v491_v23 }
  0x2b   :  { %189 = vmatpush.bf16.msra.mxu1 %v482_v10 }
  0x2d   :  { %354 = vmatpush.bf16.msra.mxu3 %v499_v37 }
  0x2e   :  { %272 = vmatpush.bf16.msra.mxu2 %v490_v24 }
  0x31   :  { %355 = vmatpush.bf16.msra.mxu3 %v498_v38 }
  0x8f   :  { %v108_v18 = vpop.f32.mrf.mxu0 }
  0x90   :  { %v109_v19 = vadd.f32 %v512_v17, %v108_v18 }
  0x92   :  { %v112_v20 = vmax.f32 %v109_v19, 0.0 }
  0x94   :  { %v113_v21 = vpack.c.bf16 %v112_v20, %v112_v20 }
  0x96   :  { %190 = vmatmul.bf16.vlgmr.msra.gmra.mxu1 %v113_v21 }
  0x97   :  { %v110_v22 = vpop.f32.mrf.mxu0 }
 0x113   :  { %v191_v32 = vpop.f32.mrf.mxu1 }
 0x114   :  { %v192_v33 = vadd.f32 %v513_v31, %v191_v32 }
 0x116   :  { %v195_v34 = vmax.f32 %v192_v33, 0.0 }
 0x118   :  { %v196_v35 = vpack.c.bf16 %v195_v34, %v195_v34 }
 0x11a   :  { %273 = vmatmul.bf16.vlgmr.msra.gmra.mxu2 %v196_v35 }
 0x11b   :  { %v193_v36 = vpop.f32.mrf.mxu1 }
 0x19d   :  { %v274_v40 = vpop.f32.mrf.mxu2 }
 0x19e   :  { %v275_v41 = vadd.f32 %v514_v39, %v274_v40 }
 0x1a0   :  { %v278_v42 = vmax.f32 %v275_v41, 0.0 }
 0x1a2   :  { %v279_v43 = vpack.c.bf16 %v278_v42, %v278_v42 }
 0x1a4   :  { %356 = vmatmul.bf16.vlgmr.msra.gmra.mxu3 %v279_v43 }
 0x1a5   :  { %v276_v44 = vpop.f32.mrf.mxu2 }
 0x227   :  { %v357_v46 = vpop.f32.mrf.mxu3 }
 0x228   :  { %v358_v47 = vadd.f32 %v515_v45, %v357_v46 }
 0x22a   :  { %361 = vst [vmem:[#allocation8] sm:$0xff] %v358_v47 }
 0x22b   :  { %372 = dma.vmem_to_hbm [thread:$0]  %s368_s11, 128, %s370_s14, [#allocation4]  }
 0x22f   :  { %v359_v48 = vpop.f32.mrf.mxu3 }
 0x230   :  { %616 = dma.done.wait [#allocation4], 128  }
 0x231   :  { %617 = vsyncadd [#allocation4], 4294967168 }
 0x232   :  { %377 = vsyncpa [#allocation3], 1 }
 0x233   :  { %378 = vsyncpa [#allocation6], 1 }
 0x234   :  { %379 = vsyncpa [#allocation4], 1 }

</bundles_post_ra>
